<compile_context>
chip_gen: v7x
topology: tpu7x:2x2x1
jax: 0.10.0
libtpu: 0.0.40
codegen_flags: <defaults>
</compile_context>

<pallas_src>
import functools

import jax
import jax.numpy as jnp
import numpy as np
from jax.experimental import pallas as pl
from jax.experimental.pallas import tpu as pltpu


# ------------------------------ kernel helpers --------------------------------

def _shifted_window(x, shift, seg_len):
    """out[c, n] = x[c, n + shift] if the source index stays inside the same
    length-`seg_len` lane segment (one batch element), else 0 (conv zero pad).

    `x` is (C, N) with N = batch_group * seg_len, `shift` is a small static
    Python int.  Everything stays in registers (no VMEM scratch round-trip).
    """
    if shift == 0:
        return x
    c, n = x.shape
    zpad = jnp.zeros((c, abs(shift)), x.dtype)
    if shift > 0:
        sh = jnp.concatenate([x[:, shift:], zpad], axis=1)
    else:
        sh = jnp.concatenate([zpad, x[:, : n + shift]], axis=1)
    # Zero positions whose shifted source falls outside its own batch segment.
    pos = jax.lax.broadcasted_iota(jnp.int32, (c, n), 1) % seg_len
    valid = jnp.logical_and(pos + shift >= 0, pos + shift < seg_len)
    return jnp.where(valid, sh, jnp.zeros_like(sh))


def _fused_conv(x, w_ref, ksize, seg_len):
    """Conv1d (stride=1, 'same' zero padding) as ONE MXU matmul:
    (Cout, K*Cin) @ (K*Cin, N), contraction index ordered (tap, cin)."""
    pad = (ksize - 1) // 2
    windows = [_shifted_window(x, k - pad, seg_len) for k in range(ksize)]
    stacked = jnp.concatenate(windows, axis=0)            # (K*Cin, N)
    return jnp.dot(w_ref[...], stacked, preferred_element_type=jnp.float32)


def _block_kernel(x_ref, w1_ref, b1_ref, w2_ref, b2_ref, o_ref, *,
                  seg_len, k1, k2, compute_dtype):
    """BasicBlock1d_wang for one batch group, fully register-resident.

    x_ref : (Cin,  BG*L) f32    input, batch folded into the lane axis
    w1_ref: (Cout, K1*Cin)      conv1 weights with BN1 scale folded in
    b1_ref: (Cout, 1)     f32   folded BN1 shift
    w2_ref: (Cout, K2*Cout)     conv2 weights with BN2 scale folded in
    b2_ref: (Cout, 1)     f32   folded BN2 shift
    o_ref : (Cout, BG*L)  f32   output
    """
    x = x_ref[...]                                         # f32 (exact residual)
    xb = x.astype(compute_dtype)

    # conv1 + folded BN1 + ReLU  (single fused-tap matmul, f32 accumulate)
    h = jnp.maximum(_fused_conv(xb, w1_ref, k1, seg_len) + b1_ref[...], 0.0)

    # conv2 + folded BN2  (h never leaves registers)
    y = _fused_conv(h.astype(compute_dtype), w2_ref, k2, seg_len) + b2_ref[...]

    # identity residual + final ReLU
    o_ref[...] = jnp.maximum(y + x, 0.0).astype(o_ref.dtype)


# ---------------------------------- wrapper -----------------------------------

def basic_block1d_wang(x, params, *, eps=1e-5, compute_dtype=jnp.bfloat16,
                       batch_tile=None):
    """BasicBlock1d_wang forward (eval mode), stride=1 / downsample=None.

    x            : (B, Cin, L) float32, PyTorch NCL layout
    params       : (w1, g1, be1, m1, v1, w2, g2, be2, m2, v2) in PyTorch layout
    compute_dtype: MXU input dtype (jnp.bfloat16 fast path or jnp.float32 exact)
    batch_tile   : batch elements per grid step; None folds all of B into one
                   step (best for small B).  For large B -- or to keep a
                   "parallel" axis of >= 2 for v7x's two TensorCores -- pick a
                   divisor of B.
    """
    (w1, g1, be1, m1, v1, w2, g2, be2, m2, v2) = params
    cout, cin, k1 = w1.shape
    k2 = w2.shape[-1]
    b, _, l = x.shape
    assert cin == cout, "identity residual requires inplanes == planes"

    bg = b if batch_tile is None else batch_tile
    assert b % bg == 0, "batch_tile must divide the batch size"
    grid = (b // bg,)
    n = b * l
    ng = bg * l

    # Fold eval-mode BatchNorm into the bias-free convs (wrapper-side glue).
    s1 = g1 / jnp.sqrt(v1 + eps)
    s2 = g2 / jnp.sqrt(v2 + eps)
    b1 = (be1 - m1 * s1).reshape(cout, 1).astype(jnp.float32)
    b2 = (be2 - m2 * s2).reshape(cout, 1).astype(jnp.float32)
    # (Cout, Cin, K) -> (Cout, K, Cin) -> (Cout, K*Cin): one fused-tap matmul
    # per conv, contraction index ordered (tap, cin).
    w1f = (jnp.transpose(w1 * s1[:, None, None], (0, 2, 1))
           .reshape(cout, k1 * cin).astype(compute_dtype))
    w2f = (jnp.transpose(w2 * s2[:, None, None], (0, 2, 1))
           .reshape(cout, k2 * cout).astype(compute_dtype))

    # Fold batch into the lane axis: (B, Cin, L) -> (Cin, B*L).  No length
    # padding, so last dims stay 128-aligned when L % 128 == 0.
    x2d = jnp.transpose(x.astype(jnp.float32), (1, 0, 2)).reshape(cin, n)

    wbytes = jnp.dtype(compute_dtype).itemsize
    cost = pl.CostEstimate(
        flops=2 * cout * k1 * cin * n + 2 * cout * k2 * cout * n,
        transcendentals=0,
        bytes_accessed=(cin * n * 4 + cout * n * 4
                        + (cout * k1 * cin + cout * k2 * cout) * wbytes
                        + 2 * cout * 4),
    )

    kernel = functools.partial(_block_kernel, seg_len=l, k1=k1, k2=k2,
                               compute_dtype=compute_dtype)

    out2d = pl.pallas_call(
        kernel,
        out_shape=jax.ShapeDtypeStruct((cout, n), jnp.float32),
        grid_spec=pltpu.PrefetchScalarGridSpec(
            num_scalar_prefetch=0,
            grid=grid,
            in_specs=[
                pl.BlockSpec((cin, ng), lambda g: (0, g)),
                pl.BlockSpec((cout, k1 * cin), lambda g: (0, 0)),
                pl.BlockSpec((cout, 1), lambda g: (0, 0)),
                pl.BlockSpec((cout, k2 * cout), lambda g: (0, 0)),
                pl.BlockSpec((cout, 1), lambda g: (0, 0)),
            ],
            out_specs=pl.BlockSpec((cout, ng), lambda g: (0, g)),
        ),
        compiler_params=pltpu.CompilerParams(
            dimension_semantics=("parallel",),
            vmem_limit_bytes=32 << 20,
        ),
        cost_estimate=cost,
    )(x2d, w1f, b1, w2f, b2)

    # (Cout, B*L) -> (B, Cout, L)
    return out2d.reshape(cout, b, l).transpose(1, 0, 2)


# ------------------------- pure-JAX reference --------------------------------

def basic_block_reference(x, params, *, eps=1e-5):
    (w1, g1, be1, m1, v1, w2, g2, be2, m2, v2) = params
    k1 = w1.shape[-1]
    k2 = w2.shape[-1]

    def bn(y, g, b, m, v):
        return ((y - m[None, :, None]) * (g / jnp.sqrt(v + eps))[None, :, None]
                + b[None, :, None])

    y = jax.lax.conv_general_dilated(
        x, w1, window_strides=(1,), padding=[((k1 - 1) // 2, (k1 - 1) // 2)],
        dimension_numbers=('NCH', 'OIH', 'NCH'))
    y = jnp.maximum(bn(y, g1, be1, m1, v1), 0.0)
    y = jax.lax.conv_general_dilated(
        y, w2, window_strides=(1,), padding=[((k2 - 1) // 2, (k2 - 1) // 2)],
        dimension_numbers=('NCH', 'OIH', 'NCH'))
    y = bn(y, g2, be2, m2, v2)
    return jnp.maximum(y + x, 0.0)


# ------------------------------- test harness --------------------------------

if __name__ == "__main__":
    key = jax.random.PRNGKey(0)
    ks = jax.random.split(key, 11)

    B, C, L = 2, 32, 128          # inplanes = planes = 32, stride = 1
    K1, K2 = 5, 3                 # module default kernel_size=[5, 3]

    x = jax.random.normal(ks[0], (B, C, L), jnp.float32)

    w1 = jax.random.normal(ks[1], (C, C, K1), jnp.float32) / np.sqrt(C * K1)
    g1 = jax.random.uniform(ks[2], (C,), jnp.float32, 0.5, 1.5)
    be1 = jax.random.normal(ks[3], (C,), jnp.float32) * 0.1
    m1 = jax.random.normal(ks[4], (C,), jnp.float32) * 0.1
    v1 = jax.random.uniform(ks[5], (C,), jnp.float32, 0.5, 1.5)

    w2 = jax.random.normal(ks[6], (C, C, K2), jnp.float32) / np.sqrt(C * K2)
    g2 = jax.random.uniform(ks[7], (C,), jnp.float32, 0.5, 1.5)
    be2 = jax.random.normal(ks[8], (C,), jnp.float32) * 0.1
    m2 = jax.random.normal(ks[9], (C,), jnp.float32) * 0.1
    v2 = jax.random.uniform(ks[10], (C,), jnp.float32, 0.5, 1.5)

    params = (w1, g1, be1, m1, v1, w2, g2, be2, m2, v2)
    ref = basic_block_reference(x, params)

    # Exact-structure check: f32 MXU path, tight tolerance.
    out_f32 = jax.block_until_ready(
        basic_block1d_wang(x, params, compute_dtype=jnp.float32))
    np.testing.assert_allclose(np.asarray(out_f32), np.asarray(ref),
                               rtol=1e-4, atol=1e-4)

    # Fast bf16 MXU path (intentional accuracy trade-off -> looser tolerance).
    out_bf16 = jax.block_until_ready(
        basic_block1d_wang(x, params, compute_dtype=jnp.bfloat16))
    np.testing.assert_allclose(np.asarray(out_bf16), np.asarray(ref),
                               rtol=5e-2, atol=5e-2)

    print("KERNEL_OK")
</pallas_src>

<mosaic_0001>
module attributes {stable_mosaic.version = 11 : i64} {
  func.func @_block_kernel(%arg0: i32, %arg1: memref<32x256xf32, #tpu.memory_space<vmem>>, %arg2: memref<32x160xf32, #tpu.memory_space<vmem>>, %arg3: memref<32x1xf32, #tpu.memory_space<vmem>>, %arg4: memref<32x96xf32, #tpu.memory_space<vmem>>, %arg5: memref<32x1xf32, #tpu.memory_space<vmem>>, %arg6: memref<32x256xf32, #tpu.memory_space<vmem>>) attributes {dimension_semantics = [#tpu.dimension_semantics<parallel>], iteration_bounds = array<i64: 1>, scalar_prefetch = 0 : i64, scratch_operands = 0 : i64, tpu.core_type = #tpu.core_type<tc>, window_params = [{transform_indices = @transform_0, window_bounds = array<i64: 32, 256>}, {pipeline_mode = #tpu.pipeline_mode<synchronous>, transform_indices = @transform_1, window_bounds = array<i64: 32, 160>}, {pipeline_mode = #tpu.pipeline_mode<synchronous>, transform_indices = @transform_2, window_bounds = array<i64: 32, 1>}, {pipeline_mode = #tpu.pipeline_mode<synchronous>, transform_indices = @transform_3, window_bounds = array<i64: 32, 96>}, {pipeline_mode = #tpu.pipeline_mode<synchronous>, transform_indices = @transform_4, window_bounds = array<i64: 32, 1>}, {transform_indices = @transform_5, window_bounds = array<i64: 32, 256>}]} {
    %c0 = arith.constant 0 : index
    %c0_0 = arith.constant 0 : index
    %0 = vector.load %arg1[%c0, %c0_0] : memref<32x256xf32, #tpu.memory_space<vmem>>, vector<32x256xf32>
    %cst = arith.constant 0.000000e+00 : f32
    %1 = vector.broadcast %cst : f32 to vector<32x2xf32>
    %2 = vector.extract_strided_slice %0 {offsets = [0, 0], sizes = [32, 254], strides = [1, 1]} : vector<32x256xf32> to vector<32x254xf32>
    %3 = tpu.concatenate %1, %2 in 1 : vector<32x2xf32>, vector<32x254xf32> -> vector<32x256xf32>
    %4 = tpu.iota {dimensions = array<i32: 1>} : vector<32x256xi32>
    %c128_i32 = arith.constant 128 : i32
    %c0_i32 = arith.constant 0 : i32
    %5 = arith.cmpi eq, %c128_i32, %c0_i32 : i32
    %c1_i32 = arith.constant 1 : i32
    %6 = arith.select %5, %c1_i32, %c128_i32 : i32
    %7 = vector.broadcast %6 : i32 to vector<32x256xi32>
    %8 = arith.remsi %4, %7 : vector<32x256xi32>
    %c0_i32_1 = arith.constant 0 : i32
    %9 = vector.broadcast %c0_i32_1 : i32 to vector<32x256xi32>
    %10 = arith.cmpi ne, %8, %9 : vector<32x256xi32>
    %c0_i32_2 = arith.constant 0 : i32
    %11 = vector.broadcast %c0_i32_2 : i32 to vector<32x256xi32>
    %12 = arith.cmpi slt, %8, %11 : vector<32x256xi32>
    %c0_i32_3 = arith.constant 0 : i32
    %13 = arith.cmpi slt, %6, %c0_i32_3 : i32
    %14 = vector.broadcast %13 : i1 to vector<32x256xi1>
    %15 = vector.broadcast %14 : vector<32x256xi1> to vector<32x256xi1>
    %16 = arith.xori %12, %15 : vector<32x256xi1>
    %17 = arith.andi %16, %10 : vector<32x256xi1>
    %18 = vector.broadcast %6 : i32 to vector<32x256xi32>
    %19 = arith.addi %8, %18 : vector<32x256xi32>
    %20 = arith.select %17, %19, %8 : vector<32x256xi1>, vector<32x256xi32>
    %c-2_i32 = arith.constant -2 : i32
    %21 = vector.broadcast %c-2_i32 : i32 to vector<32x256xi32>
    %22 = arith.addi %20, %21 : vector<32x256xi32>
    %c0_i32_4 = arith.constant 0 : i32
    %23 = vector.broadcast %c0_i32_4 : i32 to vector<32x256xi32>
    %24 = arith.cmpi sge, %22, %23 : vector<32x256xi32>
    %c-2_i32_5 = arith.constant -2 : i32
    %25 = vector.broadcast %c-2_i32_5 : i32 to vector<32x256xi32>
    %26 = arith.addi %20, %25 : vector<32x256xi32>
    %c128_i32_6 = arith.constant 128 : i32
    %27 = vector.broadcast %c128_i32_6 : i32 to vector<32x256xi32>
    %28 = arith.cmpi slt, %26, %27 : vector<32x256xi32>
    %29 = arith.andi %24, %28 : vector<32x256xi1>
    %cst_7 = arith.constant 0.000000e+00 : f32
    %30 = vector.broadcast %cst_7 : f32 to vector<32x256xf32>
    %31 = arith.select %29, %3, %30 : vector<32x256xi1>, vector<32x256xf32>
    %cst_8 = arith.constant 0.000000e+00 : f32
    %32 = vector.broadcast %cst_8 : f32 to vector<32x1xf32>
    %33 = vector.extract_strided_slice %0 {offsets = [0, 0], sizes = [32, 255], strides = [1, 1]} : vector<32x256xf32> to vector<32x255xf32>
    %34 = tpu.concatenate %32, %33 in 1 : vector<32x1xf32>, vector<32x255xf32> -> vector<32x256xf32>
    %35 = tpu.iota {dimensions = array<i32: 1>} : vector<32x256xi32>
    %c128_i32_9 = arith.constant 128 : i32
    %c0_i32_10 = arith.constant 0 : i32
    %36 = arith.cmpi eq, %c128_i32_9, %c0_i32_10 : i32
    %c1_i32_11 = arith.constant 1 : i32
    %37 = arith.select %36, %c1_i32_11, %c128_i32_9 : i32
    %38 = vector.broadcast %37 : i32 to vector<32x256xi32>
    %39 = arith.remsi %35, %38 : vector<32x256xi32>
    %c0_i32_12 = arith.constant 0 : i32
    %40 = vector.broadcast %c0_i32_12 : i32 to vector<32x256xi32>
    %41 = arith.cmpi ne, %39, %40 : vector<32x256xi32>
    %c0_i32_13 = arith.constant 0 : i32
    %42 = vector.broadcast %c0_i32_13 : i32 to vector<32x256xi32>
    %43 = arith.cmpi slt, %39, %42 : vector<32x256xi32>
    %c0_i32_14 = arith.constant 0 : i32
    %44 = arith.cmpi slt, %37, %c0_i32_14 : i32
    %45 = vector.broadcast %44 : i1 to vector<32x256xi1>
    %46 = vector.broadcast %45 : vector<32x256xi1> to vector<32x256xi1>
    %47 = arith.xori %43, %46 : vector<32x256xi1>
    %48 = arith.andi %47, %41 : vector<32x256xi1>
    %49 = vector.broadcast %37 : i32 to vector<32x256xi32>
    %50 = arith.addi %39, %49 : vector<32x256xi32>
    %51 = arith.select %48, %50, %39 : vector<32x256xi1>, vector<32x256xi32>
    %c-1_i32 = arith.constant -1 : i32
    %52 = vector.broadcast %c-1_i32 : i32 to vector<32x256xi32>
    %53 = arith.addi %51, %52 : vector<32x256xi32>
    %c0_i32_15 = arith.constant 0 : i32
    %54 = vector.broadcast %c0_i32_15 : i32 to vector<32x256xi32>
    %55 = arith.cmpi sge, %53, %54 : vector<32x256xi32>
    %c-1_i32_16 = arith.constant -1 : i32
    %56 = vector.broadcast %c-1_i32_16 : i32 to vector<32x256xi32>
    %57 = arith.addi %51, %56 : vector<32x256xi32>
    %c128_i32_17 = arith.constant 128 : i32
    %58 = vector.broadcast %c128_i32_17 : i32 to vector<32x256xi32>
    %59 = arith.cmpi slt, %57, %58 : vector<32x256xi32>
    %60 = arith.andi %55, %59 : vector<32x256xi1>
    %cst_18 = arith.constant 0.000000e+00 : f32
    %61 = vector.broadcast %cst_18 : f32 to vector<32x256xf32>
    %62 = arith.select %60, %34, %61 : vector<32x256xi1>, vector<32x256xf32>
    %cst_19 = arith.constant 0.000000e+00 : f32
    %63 = vector.broadcast %cst_19 : f32 to vector<32x1xf32>
    %64 = vector.extract_strided_slice %0 {offsets = [0, 1], sizes = [32, 255], strides = [1, 1]} : vector<32x256xf32> to vector<32x255xf32>
    %65 = tpu.concatenate %64, %63 in 1 : vector<32x255xf32>, vector<32x1xf32> -> vector<32x256xf32>
    %66 = tpu.iota {dimensions = array<i32: 1>} : vector<32x256xi32>
    %c128_i32_20 = arith.constant 128 : i32
    %c0_i32_21 = arith.constant 0 : i32
    %67 = arith.cmpi eq, %c128_i32_20, %c0_i32_21 : i32
    %c1_i32_22 = arith.constant 1 : i32
    %68 = arith.select %67, %c1_i32_22, %c128_i32_20 : i32
    %69 = vector.broadcast %68 : i32 to vector<32x256xi32>
    %70 = arith.remsi %66, %69 : vector<32x256xi32>
    %c0_i32_23 = arith.constant 0 : i32
    %71 = vector.broadcast %c0_i32_23 : i32 to vector<32x256xi32>
    %72 = arith.cmpi ne, %70, %71 : vector<32x256xi32>
    %c0_i32_24 = arith.constant 0 : i32
    %73 = vector.broadcast %c0_i32_24 : i32 to vector<32x256xi32>
    %74 = arith.cmpi slt, %70, %73 : vector<32x256xi32>
    %c0_i32_25 = arith.constant 0 : i32
    %75 = arith.cmpi slt, %68, %c0_i32_25 : i32
    %76 = vector.broadcast %75 : i1 to vector<32x256xi1>
    %77 = vector.broadcast %76 : vector<32x256xi1> to vector<32x256xi1>
    %78 = arith.xori %74, %77 : vector<32x256xi1>
    %79 = arith.andi %78, %72 : vector<32x256xi1>
    %80 = vector.broadcast %68 : i32 to vector<32x256xi32>
    %81 = arith.addi %70, %80 : vector<32x256xi32>
    %82 = arith.select %79, %81, %70 : vector<32x256xi1>, vector<32x256xi32>
    %c1_i32_26 = arith.constant 1 : i32
    %83 = vector.broadcast %c1_i32_26 : i32 to vector<32x256xi32>
    %84 = arith.addi %82, %83 : vector<32x256xi32>
    %c0_i32_27 = arith.constant 0 : i32
    %85 = vector.broadcast %c0_i32_27 : i32 to vector<32x256xi32>
    %86 = arith.cmpi sge, %84, %85 : vector<32x256xi32>
    %c1_i32_28 = arith.constant 1 : i32
    %87 = vector.broadcast %c1_i32_28 : i32 to vector<32x256xi32>
    %88 = arith.addi %82, %87 : vector<32x256xi32>
    %c128_i32_29 = arith.constant 128 : i32
    %89 = vector.broadcast %c128_i32_29 : i32 to vector<32x256xi32>
    %90 = arith.cmpi slt, %88, %89 : vector<32x256xi32>
    %91 = arith.andi %86, %90 : vector<32x256xi1>
    %cst_30 = arith.constant 0.000000e+00 : f32
    %92 = vector.broadcast %cst_30 : f32 to vector<32x256xf32>
    %93 = arith.select %91, %65, %92 : vector<32x256xi1>, vector<32x256xf32>
    %cst_31 = arith.constant 0.000000e+00 : f32
    %94 = vector.broadcast %cst_31 : f32 to vector<32x2xf32>
    %95 = vector.extract_strided_slice %0 {offsets = [0, 2], sizes = [32, 254], strides = [1, 1]} : vector<32x256xf32> to vector<32x254xf32>
    %96 = tpu.concatenate %95, %94 in 1 : vector<32x254xf32>, vector<32x2xf32> -> vector<32x256xf32>
    %97 = tpu.iota {dimensions = array<i32: 1>} : vector<32x256xi32>
    %c128_i32_32 = arith.constant 128 : i32
    %c0_i32_33 = arith.constant 0 : i32
    %98 = arith.cmpi eq, %c128_i32_32, %c0_i32_33 : i32
    %c1_i32_34 = arith.constant 1 : i32
    %99 = arith.select %98, %c1_i32_34, %c128_i32_32 : i32
    %100 = vector.broadcast %99 : i32 to vector<32x256xi32>
    %101 = arith.remsi %97, %100 : vector<32x256xi32>
    %c0_i32_35 = arith.constant 0 : i32
    %102 = vector.broadcast %c0_i32_35 : i32 to vector<32x256xi32>
    %103 = arith.cmpi ne, %101, %102 : vector<32x256xi32>
    %c0_i32_36 = arith.constant 0 : i32
    %104 = vector.broadcast %c0_i32_36 : i32 to vector<32x256xi32>
    %105 = arith.cmpi slt, %101, %104 : vector<32x256xi32>
    %c0_i32_37 = arith.constant 0 : i32
    %106 = arith.cmpi slt, %99, %c0_i32_37 : i32
    %107 = vector.broadcast %106 : i1 to vector<32x256xi1>
    %108 = vector.broadcast %107 : vector<32x256xi1> to vector<32x256xi1>
    %109 = arith.xori %105, %108 : vector<32x256xi1>
    %110 = arith.andi %109, %103 : vector<32x256xi1>
    %111 = vector.broadcast %99 : i32 to vector<32x256xi32>
    %112 = arith.addi %101, %111 : vector<32x256xi32>
    %113 = arith.select %110, %112, %101 : vector<32x256xi1>, vector<32x256xi32>
    %c2_i32 = arith.constant 2 : i32
    %114 = vector.broadcast %c2_i32 : i32 to vector<32x256xi32>
    %115 = arith.addi %113, %114 : vector<32x256xi32>
    %c0_i32_38 = arith.constant 0 : i32
    %116 = vector.broadcast %c0_i32_38 : i32 to vector<32x256xi32>
    %117 = arith.cmpi sge, %115, %116 : vector<32x256xi32>
    %c2_i32_39 = arith.constant 2 : i32
    %118 = vector.broadcast %c2_i32_39 : i32 to vector<32x256xi32>
    %119 = arith.addi %113, %118 : vector<32x256xi32>
    %c128_i32_40 = arith.constant 128 : i32
    %120 = vector.broadcast %c128_i32_40 : i32 to vector<32x256xi32>
    %121 = arith.cmpi slt, %119, %120 : vector<32x256xi32>
    %122 = arith.andi %117, %121 : vector<32x256xi1>
    %cst_41 = arith.constant 0.000000e+00 : f32
    %123 = vector.broadcast %cst_41 : f32 to vector<32x256xf32>
    %124 = arith.select %122, %96, %123 : vector<32x256xi1>, vector<32x256xf32>
    %125 = tpu.concatenate %31, %62, %0, %93, %124 in 0 : vector<32x256xf32>, vector<32x256xf32>, vector<32x256xf32>, vector<32x256xf32>, vector<32x256xf32> -> vector<160x256xf32>
    %c0_42 = arith.constant 0 : index
    %c0_43 = arith.constant 0 : index
    %126 = vector.load %arg2[%c0_42, %c0_43] : memref<32x160xf32, #tpu.memory_space<vmem>>, vector<32x160xf32>
    %cst_44 = arith.constant dense<0.000000e+00> : vector<32x256xf32>
    %127 = tpu.matmul %126, %125, %cst_44 {dimension_numbers = #tpu.dot_dimension_numbers<[1], [0], [0], [1], [0, 0, 1, 1], [], []>} : vector<32x160xf32>, vector<160x256xf32>, vector<32x256xf32> -> vector<32x256xf32>
    %c0_45 = arith.constant 0 : index
    %c0_46 = arith.constant 0 : index
    %128 = vector.load %arg3[%c0_45, %c0_46] : memref<32x1xf32, #tpu.memory_space<vmem>>, vector<32x1xf32>
    %129 = vector.broadcast %128 : vector<32x1xf32> to vector<32x256xf32>
    %130 = arith.addf %127, %129 : vector<32x256xf32>
    %cst_47 = arith.constant 0.000000e+00 : f32
    %131 = vector.broadcast %cst_47 : f32 to vector<32x256xf32>
    %132 = arith.maximumf %130, %131 : vector<32x256xf32>
    %cst_48 = arith.constant 0.000000e+00 : f32
    %133 = vector.broadcast %cst_48 : f32 to vector<32x1xf32>
    %134 = vector.extract_strided_slice %132 {offsets = [0, 0], sizes = [32, 255], strides = [1, 1]} : vector<32x256xf32> to vector<32x255xf32>
    %135 = tpu.concatenate %133, %134 in 1 : vector<32x1xf32>, vector<32x255xf32> -> vector<32x256xf32>
    %136 = tpu.iota {dimensions = array<i32: 1>} : vector<32x256xi32>
    %c128_i32_49 = arith.constant 128 : i32
    %c0_i32_50 = arith.constant 0 : i32
    %137 = arith.cmpi eq, %c128_i32_49, %c0_i32_50 : i32
    %c1_i32_51 = arith.constant 1 : i32
    %138 = arith.select %137, %c1_i32_51, %c128_i32_49 : i32
    %139 = vector.broadcast %138 : i32 to vector<32x256xi32>
    %140 = arith.remsi %136, %139 : vector<32x256xi32>
    %c0_i32_52 = arith.constant 0 : i32
    %141 = vector.broadcast %c0_i32_52 : i32 to vector<32x256xi32>
    %142 = arith.cmpi ne, %140, %141 : vector<32x256xi32>
    %c0_i32_53 = arith.constant 0 : i32
    %143 = vector.broadcast %c0_i32_53 : i32 to vector<32x256xi32>
    %144 = arith.cmpi slt, %140, %143 : vector<32x256xi32>
    %c0_i32_54 = arith.constant 0 : i32
    %145 = arith.cmpi slt, %138, %c0_i32_54 : i32
    %146 = vector.broadcast %145 : i1 to vector<32x256xi1>
    %147 = vector.broadcast %146 : vector<32x256xi1> to vector<32x256xi1>
    %148 = arith.xori %144, %147 : vector<32x256xi1>
    %149 = arith.andi %148, %142 : vector<32x256xi1>
    %150 = vector.broadcast %138 : i32 to vector<32x256xi32>
    %151 = arith.addi %140, %150 : vector<32x256xi32>
    %152 = arith.select %149, %151, %140 : vector<32x256xi1>, vector<32x256xi32>
    %c-1_i32_55 = arith.constant -1 : i32
    %153 = vector.broadcast %c-1_i32_55 : i32 to vector<32x256xi32>
    %154 = arith.addi %152, %153 : vector<32x256xi32>
    %c0_i32_56 = arith.constant 0 : i32
    %155 = vector.broadcast %c0_i32_56 : i32 to vector<32x256xi32>
    %156 = arith.cmpi sge, %154, %155 : vector<32x256xi32>
    %c-1_i32_57 = arith.constant -1 : i32
    %157 = vector.broadcast %c-1_i32_57 : i32 to vector<32x256xi32>
    %158 = arith.addi %152, %157 : vector<32x256xi32>
    %c128_i32_58 = arith.constant 128 : i32
    %159 = vector.broadcast %c128_i32_58 : i32 to vector<32x256xi32>
    %160 = arith.cmpi slt, %158, %159 : vector<32x256xi32>
    %161 = arith.andi %156, %160 : vector<32x256xi1>
    %cst_59 = arith.constant 0.000000e+00 : f32
    %162 = vector.broadcast %cst_59 : f32 to vector<32x256xf32>
    %163 = arith.select %161, %135, %162 : vector<32x256xi1>, vector<32x256xf32>
    %cst_60 = arith.constant 0.000000e+00 : f32
    %164 = vector.broadcast %cst_60 : f32 to vector<32x1xf32>
    %165 = vector.extract_strided_slice %132 {offsets = [0, 1], sizes = [32, 255], strides = [1, 1]} : vector<32x256xf32> to vector<32x255xf32>
    %166 = tpu.concatenate %165, %164 in 1 : vector<32x255xf32>, vector<32x1xf32> -> vector<32x256xf32>
    %167 = tpu.iota {dimensions = array<i32: 1>} : vector<32x256xi32>
    %c128_i32_61 = arith.constant 128 : i32
    %c0_i32_62 = arith.constant 0 : i32
    %168 = arith.cmpi eq, %c128_i32_61, %c0_i32_62 : i32
    %c1_i32_63 = arith.constant 1 : i32
    %169 = arith.select %168, %c1_i32_63, %c128_i32_61 : i32
    %170 = vector.broadcast %169 : i32 to vector<32x256xi32>
    %171 = arith.remsi %167, %170 : vector<32x256xi32>
    %c0_i32_64 = arith.constant 0 : i32
    %172 = vector.broadcast %c0_i32_64 : i32 to vector<32x256xi32>
    %173 = arith.cmpi ne, %171, %172 : vector<32x256xi32>
    %c0_i32_65 = arith.constant 0 : i32
    %174 = vector.broadcast %c0_i32_65 : i32 to vector<32x256xi32>
    %175 = arith.cmpi slt, %171, %174 : vector<32x256xi32>
    %c0_i32_66 = arith.constant 0 : i32
    %176 = arith.cmpi slt, %169, %c0_i32_66 : i32
    %177 = vector.broadcast %176 : i1 to vector<32x256xi1>
    %178 = vector.broadcast %177 : vector<32x256xi1> to vector<32x256xi1>
    %179 = arith.xori %175, %178 : vector<32x256xi1>
    %180 = arith.andi %179, %173 : vector<32x256xi1>
    %181 = vector.broadcast %169 : i32 to vector<32x256xi32>
    %182 = arith.addi %171, %181 : vector<32x256xi32>
    %183 = arith.select %180, %182, %171 : vector<32x256xi1>, vector<32x256xi32>
    %c1_i32_67 = arith.constant 1 : i32
    %184 = vector.broadcast %c1_i32_67 : i32 to vector<32x256xi32>
    %185 = arith.addi %183, %184 : vector<32x256xi32>
    %c0_i32_68 = arith.constant 0 : i32
    %186 = vector.broadcast %c0_i32_68 : i32 to vector<32x256xi32>
    %187 = arith.cmpi sge, %185, %186 : vector<32x256xi32>
    %c1_i32_69 = arith.constant 1 : i32
    %188 = vector.broadcast %c1_i32_69 : i32 to vector<32x256xi32>
    %189 = arith.addi %183, %188 : vector<32x256xi32>
    %c128_i32_70 = arith.constant 128 : i32
    %190 = vector.broadcast %c128_i32_70 : i32 to vector<32x256xi32>
    %191 = arith.cmpi slt, %189, %190 : vector<32x256xi32>
    %192 = arith.andi %187, %191 : vector<32x256xi1>
    %cst_71 = arith.constant 0.000000e+00 : f32
    %193 = vector.broadcast %cst_71 : f32 to vector<32x256xf32>
    %194 = arith.select %192, %166, %193 : vector<32x256xi1>, vector<32x256xf32>
    %195 = tpu.concatenate %163, %132, %194 in 0 : vector<32x256xf32>, vector<32x256xf32>, vector<32x256xf32> -> vector<96x256xf32>
    %c0_72 = arith.constant 0 : index
    %c0_73 = arith.constant 0 : index
    %196 = vector.load %arg4[%c0_72, %c0_73] : memref<32x96xf32, #tpu.memory_space<vmem>>, vector<32x96xf32>
    %cst_74 = arith.constant dense<0.000000e+00> : vector<32x256xf32>
    %197 = tpu.matmul %196, %195, %cst_74 {dimension_numbers = #tpu.dot_dimension_numbers<[1], [0], [0], [1], [0, 0, 1, 1], [], []>} : vector<32x96xf32>, vector<96x256xf32>, vector<32x256xf32> -> vector<32x256xf32>
    %c0_75 = arith.constant 0 : index
    %c0_76 = arith.constant 0 : index
    %198 = vector.load %arg5[%c0_75, %c0_76] : memref<32x1xf32, #tpu.memory_space<vmem>>, vector<32x1xf32>
    %199 = vector.broadcast %198 : vector<32x1xf32> to vector<32x256xf32>
    %200 = arith.addf %197, %199 : vector<32x256xf32>
    %201 = arith.addf %200, %0 : vector<32x256xf32>
    %cst_77 = arith.constant 0.000000e+00 : f32
    %202 = vector.broadcast %cst_77 : f32 to vector<32x256xf32>
    %203 = arith.maximumf %201, %202 : vector<32x256xf32>
    %c0_78 = arith.constant 0 : index
    %c0_79 = arith.constant 0 : index
    %204 = vector.load %arg6[%c0_78, %c0_79] : memref<32x256xf32, #tpu.memory_space<vmem>>, vector<32x256xf32>
    tpu.vector_store %arg6[%c0_78, %c0_79], %203 {strides = array<i32>} : memref<32x256xf32, #tpu.memory_space<vmem>>, vector<32x256xf32>,
    return
  }
  func.func @transform_0(%arg0: i32) -> (i32, i32) {
    %c0_i32 = arith.constant 0 : i32
    %c0_i32_0 = arith.constant 0 : i32
    return %c0_i32, %arg0 : i32, i32
  }
  func.func @transform_1(%arg0: i32) -> (i32, i32) {
    %c0_i32 = arith.constant 0 : i32
    %c0_i32_0 = arith.constant 0 : i32
    %c0_i32_1 = arith.constant 0 : i32
    return %c0_i32, %c0_i32_0 : i32, i32
  }
  func.func @transform_2(%arg0: i32) -> (i32, i32) {
    %c0_i32 = arith.constant 0 : i32
    %c0_i32_0 = arith.constant 0 : i32
    %c0_i32_1 = arith.constant 0 : i32
    return %c0_i32, %c0_i32_0 : i32, i32
  }
  func.func @transform_3(%arg0: i32) -> (i32, i32) {
    %c0_i32 = arith.constant 0 : i32
    %c0_i32_0 = arith.constant 0 : i32
    %c0_i32_1 = arith.constant 0 : i32
    return %c0_i32, %c0_i32_0 : i32, i32
  }
  func.func @transform_4(%arg0: i32) -> (i32, i32) {
    %c0_i32 = arith.constant 0 : i32
    %c0_i32_0 = arith.constant 0 : i32
    %c0_i32_1 = arith.constant 0 : i32
    return %c0_i32, %c0_i32_0 : i32, i32
  }
  func.func @transform_5(%arg0: i32) -> (i32, i32) {
    %c0_i32 = arith.constant 0 : i32
    %c0_i32_0 = arith.constant 0 : i32
    return %c0_i32, %arg0 : i32, i32
  }
}

</mosaic_0001>

<bundles_post_ra>
// kernel: tpu_custom_call.1
= control target key start
LH: loop header
LB: loop body
LE: loop exit
PB: predicated region body
PF: predicated region fallthrough
CT: control target
= control target key end

     0   :  { %10 = vsyncpa [#allocation3], 0  ;;  %s1424_s0 = inlined_call_operand.vmem [shape: f32[32,256], index: 0, kind: input, shape index: {}]   ;;  %s1425_s1 = inlined_call_operand.hbm [shape: f32[32,160], index: 1, kind: input, shape index: {}]   ;;  %s1426_s2 = inlined_call_operand.vmem [shape: f32[32,1], index: 2, kind: input, shape index: {}]   ;;  %s1427_s3 = inlined_call_operand.hbm [shape: f32[32,96], index: 3, kind: input, shape index: {}]   ;;  %s1428_s4 = inlined_call_operand.vmem [shape: f32[32,1], index: 4, kind: input, shape index: {}]   ;;  %s1429_s5 = inlined_call_operand.hbm [shape: f32[32,256], index: 5, kind: output, shape index: {}]  }
   0x1   :  { %11 = vsyncpa [#allocation6], 0 }
   0x2   :  { %12 = vsyncpa [#allocation4], 0  ;;  %s1041_s18 = smov [#allocation2]   ;;  %s969_s22 = scalar_lea.hbm %s1425_s1, 1024 }
   0x3   :  { %s20_s19 = sshll.u32 %s1041_s18, 4  ;;  %p970_p0 = scmp.ne.s32.totalorder %s1425_s1, %s969_s22  ;;  %s21_s19 = int_to_ptr.vmem [resolvable:$true] %s20_s19 }
   0x4   :  { %p973_p1 = scmp.lt.u32.totalorder %s969_s22, %s1425_s1 }
   0x6   :  { %p975_p2 = pnand %p973_p1, %p970_p0 }
   0x8   :  { %978 = shalt.err (!%p975_p2)
}
   0x9   :  { %s979_s27 = scalar_lea.vmem %s21_s19, 1024  ;;  %p984_p4 = scmp.lt.s32.totalorder %s21_s19, %s21_s19 }
   0xa   :  { %p980_p3 = scmp.ne.s32.totalorder %s21_s19, %s979_s27  ;;  %p985_p5 = scmp.lt.s32.totalorder %s979_s27, %s979_s27 }
   0xc   :  { %p986_p6 = por %p985_p5, %p984_p4 }
   0xe   :  { %p987_p7 = pnand %p986_p6, %p980_p3 }
  0x10   :  { %990 = shalt.err (!%p987_p7)
}
  0x11   :  { %s1042_s28 = smov 256   ;;  %s1043_s29 = smov 16  }
  0x12   :  { %26 = dma.hbm_to_vmem [thread:$0]  %s1425_s1, 1024, %s21_s19, [#allocation3], %s1042_s28, %s1042_s28, %s1043_s29  }
  0x13   :  { %s1044_s7 = smov [#allocation5]   ;;  %s991_s11 = scalar_lea.hbm %s1427_s3, 512 }
  0x14   :  { %s34_s8 = sshll.u32 %s1044_s7, 4  ;;  %p992_p8 = scmp.ne.s32.totalorder %s1427_s3, %s991_s11  ;;  %s35_s8 = int_to_ptr.vmem [resolvable:$true] %s34_s8 }
  0x15   :  { %p995_p9 = scmp.lt.u32.totalorder %s991_s11, %s1427_s3 }
  0x17   :  { %p997_p10 = pnand %p995_p9, %p992_p8 }
  0x19   :  { %1000 = shalt.err (!%p997_p10)
}
  0x1a   :  { %s1001_s16 = scalar_lea.vmem %s35_s8, 512  ;;  %p1006_p12 = scmp.lt.s32.totalorder %s35_s8, %s35_s8 }
  0x1b   :  { %p1002_p11 = scmp.ne.s32.totalorder %s35_s8, %s1001_s16  ;;  %p1007_p13 = scmp.lt.s32.totalorder %s1001_s16, %s1001_s16 }
  0x1d   :  { %p1008_p0 = por %p1007_p13, %p1006_p12 }
  0x1f   :  { %p1009_p1 = pnand %p1008_p0, %p1002_p11 }
  0x21   :  { %1012 = shalt.err (!%p1009_p1)
}
  0x22   :  { %s1045_s1 = smov 128   ;;  %s1046_s17 = smov 8  }
  0x23   :  { %40 = dma.hbm_to_vmem [thread:$0]  %s1427_s3, 512, %s35_s8, [#allocation6], %s1045_s1, %s1045_s1, %s1046_s17  }
  0x24   :  { %1035 = dma.done.wait [#allocation3], 1024  }
  0x25   :  { %1036 = vsyncadd [#allocation3], 4294966272 }
  0x26   :  { %1037 = dma.done.wait [#allocation6], 512  }
  0x27   :  { %1038 = vsyncadd [#allocation6], 4294966784  ;;  %v1114_v0 = vld [vmem:[%s1424_s0 + $0x20] sm:$0xff]  ;;  %v1119_v1 = vld [vmem:[%s1424_s0 + $0x28] sm:$0xff]  ;;  %s1047_s12 = smov 2   ;;  %s1048_s13 = smov 1   ;;  %v98_v22 = vlaneseq }
  0x28   :  { %v1124_v2 = vld [vmem:[%s1424_s0] sm:$0xff]  ;;  %v857_v3 = vpack.i.bf16 %v1119_v1, %v1114_v0  ;;  %v1131_v4 = vld [vmem:[%s1424_s0 + $0x8] sm:$0xff]  ;;  %v1136_v5 = vld [vmem:[%s1424_s0 + $0x30] sm:$0xff]  ;;  %s1050_s14 = smov 126   ;;  %vm320_vm0 = vcmask 261120   ;;  %v1051_v19 = vmov 0  }
  0x29   :  { %v1141_v6 = vld [vmem:[%s1424_s0 + $0x38] sm:$0xff]  ;;  %v847_v7 = vpack.i.bf16 %v1131_v4, %v1124_v2  ;;  %v1148_v8 = vld [vmem:[%s1424_s0 + $0x10] sm:$0xff]  ;;  %v902_v14 = vpack.i.bf16 %v1136_v5, %v1114_v0  ;;  %v289_v16 = vld [vmem:[#allocation2 + $0x8] sm:$0xff]  ;;  %927 = vset.pattern.permute.xlu0 %v1051_v19  ;;  %928 = vset.pattern.permute.xlu1 %v1051_v19  ;;  %v1188_v23 = vand.u32 127, %v98_v22  ;;  %vm81_vm1 = vcmask 15360  }
  0x2a   :  { %v1153_v9 = vld [vmem:[%s1424_s0 + $0x18] sm:$0xff]  ;;  %858 = vrot.lane.b32.xlu1 %v857_v3, %s1047_s12  ;;  %v862_v10 = vpack.i.bf16 %v1141_v6, %v1136_v5  ;;  %v892_v12 = vpack.i.bf16 %v1148_v8, %v1124_v2  ;;  %s1049_s0 = smov 127   ;;  %v897_v15 = vpack.i.bf16 %v1141_v6, %v1119_v1  ;;  %722 = vmatprep.mubr.msk.f32.mxu0 %vm320_vm0, %v289_v16  ;;  %v296_v17 = vld [vmem:[%s1426_s2] sm:$0xff]  ;;  %v297_v18 = vld [vmem:[%s1426_s2 + $0x8] sm:$0xff]  ;;  %vm157_vm4 = vcmask 7168  }
  0x2b   :  { %848 = vrot.lane.b32.xlu0 %v847_v7, %s1047_s12  ;;  %v852_v11 = vpack.i.bf16 %v1153_v9, %v1148_v8  ;;  %v887_v13 = vpack.i.bf16 %v1153_v9, %v1131_v4  ;;  %v298_v20 = vld [vmem:[%s1426_s2 + $0x10] sm:$0xff]  ;;  %v299_v21 = vld [vmem:[%s1426_s2 + $0x18] sm:$0xff]  ;;  %v100_v24 = vadd.s32 128, %v1188_v23  ;;  %v125_v29 = vadd.s32 4294967294, %v1188_v23 }
  0x2c   :  { %v174_v57 = vadd.s32 4294967295, %v1188_v23  ;;  %vm206_vm11 = vcmask 1039360   ;;  %v776_v47 = vpack.c.bf16 %v1136_v5, %v1114_v0  ;;  %vm255_vm15 = vcmask 1031168  }
  0x2d   :  { %v1191_v25 = vand.u32 127, %v100_v24  ;;  %vm127_vm3 = vcmp.ge.s32.totalorder %v125_v29, 0 }
  0x2e   :  { %863 = vrot.lane.b32.xlu1 %v862_v10, %s1047_s12  ;;  %vm1206_vm6 = vmpackc.low %vm127_vm3, %vm127_vm3  ;;  %vm176_vm9 = vcmp.ge.s32.totalorder %v174_v57, 0 }
  0x2f   :  { %853 = vrot.lane.b32.xlu0 %v852_v11, %s1047_s12  ;;  %v126_v28 = vadd.s32 4294967294, %v1191_v25  ;;  %v175_v40 = vadd.s32 4294967295, %v1191_v25  ;;  %vm1237_vm10 = vmpackc.low %vm176_vm9, %vm176_vm9 }
  0x31   :  { %vm128_vm2 = vcmp.ge.s32.totalorder %v126_v28, 0  ;;  %vm177_vm7 = vcmp.ge.s32.totalorder %v175_v40, 0  ;;  %v774_v40 = vpack.c.bf16 %v1141_v6, %v1119_v1 }
  0x32   :  { %873 = vrot.lane.b32.xlu1 %v852_v11, %s1048_s13  ;;  %vm1202_vm5 = vmpackc.low %vm128_vm2, %vm128_vm2 }
  0x33   :  { %868 = vrot.lane.b32.xlu0 %v847_v7, %s1048_s13  ;;  %vm1225_vm8 = vmpackc.low %vm177_vm7, %vm177_vm7 }
  0x36   :  { %883 = vrot.lane.b32.xlu1 %v862_v10, %s1048_s13 }
  0x37   :  { %878 = vrot.lane.b32.xlu0 %v857_v3, %s1048_s13 }
  0x3a   :  { %893 = vrot.lane.b32.xlu1 %v892_v12, %s1049_s0 }
  0x3b   :  { %888 = vrot.lane.b32.xlu0 %v887_v13, %s1049_s0 }
  0x3e   :  { %903 = vrot.lane.b32.xlu1 %v902_v14, %s1049_s0 }
  0x3f   :  { %898 = vrot.lane.b32.xlu0 %v897_v15, %s1049_s0 }
  0x42   :  { %913 = vrot.lane.b32.xlu1 %v892_v12, %s1050_s14 }
  0x43   :  { %908 = vrot.lane.b32.xlu0 %v887_v13, %s1050_s14 }
  0x46   :  { %923 = vrot.lane.b32.xlu1 %v902_v14, %s1050_s14 }
  0x47   :  { %918 = vrot.lane.b32.xlu0 %v897_v15, %s1050_s14 }
  0x4a   :  { %307 = vperm.xlu1 %928, %v297_v18  }
  0x4b   :  { %302 = vperm.xlu0 %927, %v296_v17  }
  0x4e   :  { %312 = vperm.xlu1 %928, %v298_v20  }
  0x4f   :  { %317 = vperm.xlu0 %927, %v299_v21  }
  0x9c   :  { %v859_v26 = vpop.permute.xlu1 %858 }
  0x9d   :  { %v849_v27 = vpop.permute.xlu0 %848  ;;  %v861_v30 = vunpack.i.h.bf16 %v859_v26  ;;  %v860_v31 = vunpack.i.l.bf16 %v859_v26 }
  0x9e   :  { %v850_v32 = vunpack.i.l.bf16 %v849_v27  ;;  %v851_v33 = vunpack.i.h.bf16 %v849_v27 }
  0x9f   :  { %v84_v41 = vsel %vm81_vm1, %v860_v31, %v861_v30  ;;  %v96_v58 = vsel %vm81_vm1, 0.0, %v860_v31  ;;  %v770_v30 = vpack.c.bf16 %v1153_v9, %v1131_v4 }
  0xa0   :  { %v864_v34 = vpop.permute.xlu1 %863  ;;  %v94_v42 = vsel %vm81_vm1, 0.0, %v850_v32  ;;  %v82_v45 = vsel %vm81_vm1, %v850_v32, %v851_v33 }
  0xa1   :  { %v866_v35 = vunpack.i.h.bf16 %v864_v34  ;;  %v865_v36 = vunpack.i.l.bf16 %v864_v34  ;;  %v854_v37 = vpop.permute.xlu0 %853 }
  0xa2   :  { %v856_v38 = vunpack.i.h.bf16 %v854_v37  ;;  %v855_v39 = vunpack.i.l.bf16 %v854_v37 }
  0xa3   :  { %v85_v43 = vsel %vm81_vm1, %v865_v36, %v866_v35  ;;  %v97_v59 = vsel %vm81_vm1, 0.0, %v865_v36  ;;  %v224_v35 = vadd.s32 1, %v1191_v25  ;;  %v772_v36 = vpack.c.bf16 %v1148_v8, %v1124_v2 }
  0xa4   :  { %v95_v44 = vsel %vm81_vm1, 0.0, %v855_v39  ;;  %v83_v46 = vsel %vm81_vm1, %v855_v39, %v856_v38  ;;  %v874_v48 = vpop.permute.xlu1 %873  ;;  %v752_v60 = vpack.c.bf16 %v85_v43, %v84_v41  ;;  %v755_v14 = vpack.c.bf16 %v97_v59, %v96_v58 }
  0xa5   :  { %v746_v49 = vpack.c.bf16 %v83_v46, %v82_v45  ;;  %v749_v50 = vpack.c.bf16 %v95_v44, %v94_v42  ;;  %v876_v52 = vunpack.i.h.bf16 %v874_v48  ;;  %v875_v53 = vunpack.i.l.bf16 %v874_v48  ;;  %v869_v54 = vpop.permute.xlu0 %868 }
  0xa6   :  { %v871_v55 = vunpack.i.h.bf16 %v869_v54  ;;  %v870_v56 = vunpack.i.l.bf16 %v869_v54  ;;  %v223_v38 = vadd.s32 1, %v1188_v23  ;;  %vm228_vm12 = vcmp.lt.s32.totalorder %v224_v35, 128  ;;  %v293_v35 = vld [vmem:[#allocation2 + $0x28] sm:$0xff] }
  0xa7   :  { %748 = vmatprep.subr.msk.bf16.mxu0 %vm1202_vm5, %v746_v49  ;;  %v159_v61 = vsel %vm157_vm4, %v875_v53, %v876_v52  ;;  %v171_v62 = vsel %vm157_vm4, 0.0, %v875_v53  ;;  %vm1263_vm14 = vmpackc.low %vm228_vm12, %vm228_vm12  ;;  %v273_v59 = vadd.s32 2, %v1191_v25 }
  0xa8   :  { %751 = vmatpush1.bf16.msk.msra.mxu0 %vm1206_vm6, %v749_v50  ;;  %v158_v63 = vsel %vm157_vm4, %v870_v56, %v871_v55  ;;  %v884_v3 = vpop.permute.xlu1 %883  ;;  %v170_v7 = vsel %vm157_vm4, 0.0, %v870_v56  ;;  %vm227_vm13 = vcmp.lt.s32.totalorder %v223_v38, 128  ;;  %v294_v38 = vld [vmem:[#allocation2 + $0x30] sm:$0xff] }
  0xa9   :  { %v758_v10 = vpack.c.bf16 %v159_v61, %v158_v63  ;;  %754 = vmatprep.subr.msk.bf16.mxu0 %vm1202_vm5, %v752_v60  ;;  %v886_v11 = vunpack.i.h.bf16 %v884_v3  ;;  %v885_v12 = vunpack.i.l.bf16 %v884_v3  ;;  %v879_v13 = vpop.permute.xlu0 %878  ;;  %v761_v19 = vpack.c.bf16 %v171_v62, %v170_v7  ;;  %vm1275_vm1 = vmpackc.low %vm227_vm13, %vm227_vm13 }
  0xaa   :  { %v881_v15 = vunpack.i.h.bf16 %v879_v13  ;;  %v880_v16 = vunpack.i.l.bf16 %v879_v13  ;;  %v272_v62 = vadd.s32 2, %v1188_v23  ;;  %vm277_vm2 = vcmp.lt.s32.totalorder %v273_v59, 128 }
  0xab   :  { %v161_v18 = vsel %vm157_vm4, %v885_v12, %v886_v11  ;;  %v173_v22 = vsel %vm157_vm4, 0.0, %v885_v12  ;;  %vm791_vm3 = vmpackc.low %vm277_vm2, %vm277_vm2 }
  0xac   :  { %757 = vmatpush1.bf16.msk.msra.mxu0 %vm1206_vm6, %v755_v14  ;;  %v160_v20 = vsel %vm157_vm4, %v880_v16, %v881_v15  ;;  %v894_v21 = vpop.permute.xlu1 %893  ;;  %v172_v24 = vsel %vm157_vm4, 0.0, %v880_v16  ;;  %vm276_vm5 = vcmp.lt.s32.totalorder %v272_v62, 128 }
  0xad   :  { %v764_v26 = vpack.c.bf16 %v161_v18, %v160_v20  ;;  %760 = vmatprep.subr.msk.bf16.mxu0 %vm1225_vm8, %v758_v10  ;;  %v889_v28 = vpop.permute.xlu0 %888  ;;  %v767_v29 = vpack.c.bf16 %v173_v22, %v172_v24  ;;  %v896_v37 = vunpack.i.h.bf16 %v894_v21  ;;  %v895_v39 = vunpack.i.l.bf16 %v894_v21  ;;  %vm794_vm6 = vmpackc.low %vm276_vm5, %vm276_vm5 }
  0xae   :  { %v891_v32 = vunpack.i.h.bf16 %v889_v28  ;;  %v890_v33 = vunpack.i.l.bf16 %v889_v28 }
  0xb0   :  { %763 = vmatpush1.bf16.msk.msra.mxu0 %vm1237_vm10, %v761_v19  ;;  %v904_v34 = vpop.permute.xlu1 %903  ;;  %v220_v42 = vsel %vm206_vm11, %v891_v32, 0.0  ;;  %v219_v43 = vsel %vm206_vm11, %v890_v33, 0.0  ;;  %v208_v46 = vsel %vm206_vm11, %v896_v37, %v891_v32  ;;  %v207_v49 = vsel %vm206_vm11, %v895_v39, %v890_v33  ;;  %v288_v32 = vld [vmem:[#allocation2] sm:$0xff]  ;;  %v291_v33 = vld [vmem:[#allocation2 + $0x18] sm:$0xff] }
  0xb1   :  { %766 = vmatprep.subr.msk.bf16.mxu0 %vm1225_vm8, %v764_v26  ;;  %v899_v31 = vpop.permute.xlu0 %898  ;;  %v778_v50 = vpack.c.bf16 %v220_v42, %v219_v43  ;;  %v906_v51 = vunpack.i.h.bf16 %v904_v34  ;;  %v905_v52 = vunpack.i.l.bf16 %v904_v34  ;;  %v781_v60 = vpack.c.bf16 %v208_v46, %v207_v49  ;;  %v290_v34 = vld [vmem:[#allocation2 + $0x10] sm:$0xff]  ;;  %v295_v37 = vld [vmem:[#allocation2 + $0x38] sm:$0xff] }
  0xb2   :  { %v901_v44 = vunpack.i.h.bf16 %v899_v31  ;;  %v900_v45 = vunpack.i.l.bf16 %v899_v31 }
  0xb4   :  { %769 = vmatpush1.bf16.msk.msra.mxu0 %vm1237_vm10, %v767_v29  ;;  %v914_v48 = vpop.permute.xlu1 %913  ;;  %v222_v53 = vsel %vm206_vm11, %v901_v44, 0.0  ;;  %v221_v54 = vsel %vm206_vm11, %v900_v45, 0.0  ;;  %v210_v63 = vsel %vm206_vm11, %v906_v51, %v901_v44  ;;  %v209_v3 = vsel %vm206_vm11, %v905_v52, %v900_v45 }
  0xb5   :  { %771 = vmatprep.subr.bf16.mxu0 %v770_v30  ;;  %v909_v41 = vpop.permute.xlu0 %908  ;;  %v916_v61 = vunpack.i.h.bf16 %v914_v48  ;;  %v784_v7 = vpack.c.bf16 %v222_v53, %v221_v54  ;;  %v915_v25 = vunpack.i.l.bf16 %v914_v48  ;;  %v787_v15 = vpack.c.bf16 %v210_v63, %v209_v3 }
  0xb6   :  { %v911_v56 = vunpack.i.h.bf16 %v909_v41  ;;  %v910_v57 = vunpack.i.l.bf16 %v909_v41 }
  0xb8   :  { %773 = vmatpush1.bf16.msra.mxu0 %v772_v36  ;;  %v269_v11 = vsel %vm255_vm15, %v911_v56, 0.0  ;;  %v268_v12 = vsel %vm255_vm15, %v910_v57, 0.0  ;;  %v924_v23 = vpop.permute.xlu1 %923  ;;  %v257_v16 = vsel %vm255_vm15, %v916_v61, %v911_v56  ;;  %v256_v18 = vsel %vm255_vm15, %v915_v25, %v910_v57  ;;  %v292_v36 = vld [vmem:[#allocation2 + $0x20] sm:$0xff] }
  0xb9   :  { %775 = vmatprep.subr.bf16.mxu0 %v774_v40  ;;  %v919_v58 = vpop.permute.xlu0 %918  ;;  %v790_v19 = vpack.c.bf16 %v269_v11, %v268_v12  ;;  %v926_v20 = vunpack.i.h.bf16 %v924_v23  ;;  %v925_v21 = vunpack.i.l.bf16 %v924_v23  ;;  %v793_v26 = vpack.c.bf16 %v257_v16, %v256_v18 }
  0xba   :  { %v921_v13 = vunpack.i.h.bf16 %v919_v58  ;;  %v920_v14 = vunpack.i.l.bf16 %v919_v58 }
  0xbc   :  { %777 = vmatpush1.bf16.msra.mxu0 %v776_v47  ;;  %v271_v22 = vsel %vm255_vm15, %v921_v13, 0.0  ;;  %v270_v24 = vsel %vm255_vm15, %v920_v14, 0.0  ;;  %v259_v28 = vsel %vm255_vm15, %v926_v20, %v921_v13  ;;  %v258_v29 = vsel %vm255_vm15, %v925_v21, %v920_v14 }
  0xbd   :  { %780 = vmatprep.subr.msk.bf16.mxu0 %vm1263_vm14, %v778_v50  ;;  %v796_v30 = vpack.c.bf16 %v271_v22, %v270_v24  ;;  %v799_v31 = vpack.c.bf16 %v259_v28, %v258_v29  ;;  %v523_v28 = vld [vmem:[%s1428_s4 + $0x8] sm:$0xff]  ;;  %v524_v29 = vld [vmem:[%s1428_s4 + $0x10] sm:$0xff] }
  0xc0   :  { %783 = vmatpush1.bf16.msk.msra.mxu0 %vm1275_vm1, %v781_v60 }
  0xc1   :  { %786 = vmatprep.subr.msk.bf16.mxu0 %vm1263_vm14, %v784_v7 }
  0xc4   :  { %789 = vmatpush1.bf16.msk.msra.mxu0 %vm1275_vm1, %v787_v15 }
  0xc5   :  { %792 = vmatprep.subr.msk.bf16.mxu0 %vm791_vm3, %v790_v19 }
  0xc8   :  { %795 = vmatpush1.bf16.msk.msra.mxu0 %vm794_vm6, %v793_v26  ;;  %v522_v26 = vld [vmem:[%s1428_s4] sm:$0xff] }
  0xc9   :  { %798 = vmatprep.subr.msk.bf16.mxu0 %vm791_vm3, %v796_v30  ;;  %v308_v41 = vpop.permute.xlu1 %307  ;;  %v1052_v30 = vmov 0.0  }
  0xca   :  { %v303_v39 = vpop.permute.xlu0 %302  ;;  %623 = vmatprep.mubr.f32.mxu1 %v1052_v30 }
  0xcc   :  { %801 = vmatpush1.bf16.msk.msra.mxu0 %vm794_vm6, %v799_v31  ;;  %v525_v31 = vld [vmem:[%s1428_s4 + $0x18] sm:$0xff]  ;;  %s1053_s4 = smov [#allocation7]  }
  0xcd   :  { %v313_v51 = vpop.permute.xlu1 %312  ;;  %s677_s30 = sshll.u32 %s1053_s4, 4  ;;  %s678_s30 = int_to_ptr.vmem [resolvable:$true] %s677_s30 }
  0xce   :  { %v318_v25 = vpop.permute.xlu0 %317  ;;  %s1013_s6 = scalar_lea.vmem %s678_s30, 1024  ;;  %p1018_p3 = scmp.lt.s32.totalorder %s678_s30, %s678_s30 }
  0xcf   :  { %398 = vmatmul.mubr.f32.vlgmr.msra.gmra.mrb[0].mxu0 %v288_v32  ;;  %p1014_p2 = scmp.ne.s32.totalorder %s678_s30, %s1013_s6  ;;  %p1019_p4 = scmp.lt.s32.totalorder %s1013_s6, %s1013_s6 }
  0xd0   :  { %723 = vmatprep.mubr.msk.f32.mxu0 %vm320_vm0, %v291_v33 }
  0xd1   :  { %p1020_p5 = por %p1019_p4, %p1018_p3 }
  0xd3   :  { %404 = vmatmul.mubr.f32.gmra.mrb[2].mxu0 %v290_v34  ;;  %p1021_p6 = pnand %p1020_p5, %p1014_p2 }
  0xd4   :  { %724 = vmatprep.mubr.msk.f32.mxu0 %vm320_vm0, %v293_v35 }
  0xd7   :  { %410 = vmatmul.mubr.f32.gmra.mrb[4].mxu0 %v292_v36 }
  0xd8   :  { %725 = vmatprep.mubr.msk.f32.mxu0 %vm320_vm0, %v295_v37  ;;  %vm546_vm0 = vcmask 785408  }
  0xdb   :  { %416 = vmatmul.mubr.f32.gmra.mrb[6].mxu0 %v294_v38 }
 0x1a2   :  { %v399_v40 = vpop.f32.mrb[0].mxu0 }
 0x1a3   :  { %v400_v42 = vadd.f32 %v399_v40, %v303_v39  ;;  %v401_v43 = vpop.f32.mrb[1].mxu0 }
 0x1a4   :  { %v402_v44 = vadd.f32 %v401_v43, %v303_v39 }
 0x1a5   :  { %v1296_v45 = vmax.f32 %v400_v42, 0.0 }
 0x1a6   :  { %v1298_v46 = vmax.f32 %v402_v44, 0.0  ;;  %v405_v47 = vpop.f32.mrb[2].mxu0 }
 0x1a7   :  { %v406_v48 = vadd.f32 %v405_v47, %v308_v41  ;;  %v407_v49 = vpop.f32.mrb[3].mxu0 }
 0x1a8   :  { %v408_v50 = vadd.f32 %v407_v49, %v308_v41  ;;  %v929_v52 = vpack.i.bf16 %v1298_v46, %v1296_v45 }
 0x1a9   :  { %v1302_v53 = vmax.f32 %v406_v48, 0.0 }
 0x1aa   :  { %v1304_v54 = vmax.f32 %v408_v50, 0.0  ;;  %v411_v56 = vpop.f32.mrb[4].mxu0  ;;  %930 = vrot.lane.b32.xlu1 %v929_v52, %s1048_s13 }
 0x1ab   :  { %v412_v57 = vadd.f32 %v411_v56, %v313_v51  ;;  %v413_v58 = vpop.f32.mrb[5].mxu0  ;;  %v954_v59 = vpack.i.bf16 %v1302_v53, %v1296_v45  ;;  %v816_v60 = vpack.c.bf16 %v1302_v53, %v1296_v45 }
 0x1ac   :  { %v414_v61 = vadd.f32 %v413_v58, %v313_v51  ;;  %v934_v62 = vpack.i.bf16 %v1304_v54, %v1302_v53  ;;  %v949_v63 = vpack.i.bf16 %v1304_v54, %v1298_v46  ;;  %v814_v3 = vpack.c.bf16 %v1304_v54, %v1298_v46 }
 0x1ad   :  { %v1317_v7 = vmax.f32 %v412_v57, 0.0 }
 0x1ae   :  { %v1319_v11 = vmax.f32 %v414_v61, 0.0  ;;  %v417_v12 = vpop.f32.mrb[6].mxu0  ;;  %935 = vrot.lane.b32.xlu0 %v934_v62, %s1048_s13 }
 0x1af   :  { %v418_v23 = vadd.f32 %v417_v12, %v318_v25  ;;  %v419_v13 = vpop.f32.mrb[7].mxu0 }
 0x1b0   :  { %v420_v14 = vadd.f32 %v419_v13, %v318_v25  ;;  %v939_v15 = vpack.i.bf16 %v1319_v11, %v1317_v7 }
 0x1b1   :  { %v1324_v16 = vmax.f32 %v418_v23, 0.0 }
 0x1b2   :  { %v1326_v18 = vmax.f32 %v420_v14, 0.0  ;;  %940 = vrot.lane.b32.xlu1 %v939_v15, %s1048_s13 }
 0x1b3   :  { %v964_v19 = vpack.i.bf16 %v1324_v16, %v1317_v7  ;;  %v820_v20 = vpack.c.bf16 %v1324_v16, %v1317_v7  ;;  %v518_v7 = vld [vmem:[#allocation5] sm:$0xff] }
 0x1b4   :  { %v944_v21 = vpack.i.bf16 %v1326_v18, %v1324_v16  ;;  %v959_v22 = vpack.i.bf16 %v1326_v18, %v1319_v11  ;;  %v818_v24 = vpack.c.bf16 %v1326_v18, %v1319_v11  ;;  %v519_v16 = vld [vmem:[#allocation5 + $0x8] sm:$0xff] }
 0x1b6   :  { %945 = vrot.lane.b32.xlu0 %v944_v21, %s1048_s13  ;;  %950 = vrot.lane.b32.xlu1 %v949_v63, %s1049_s0 }
 0x1ba   :  { %955 = vrot.lane.b32.xlu0 %v954_v59, %s1049_s0  ;;  %960 = vrot.lane.b32.xlu1 %v959_v22, %s1049_s0 }
 0x1be   :  { %965 = vrot.lane.b32.xlu0 %v964_v19, %s1049_s0  ;;  %528 = vperm.xlu1 %928, %v522_v26  }
 0x1c2   :  { %533 = vperm.xlu0 %927, %v523_v28   ;;  %538 = vperm.xlu1 %928, %v524_v29   ;;  %v521_v29 = vld [vmem:[#allocation5 + $0x18] sm:$0xff] }
 0x1c6   :  { %543 = vperm.xlu0 %927, %v525_v31  }
 0x21c   :  { %v931_v32 = vpop.permute.xlu1 %930 }
 0x21d   :  { %v933_v33 = vunpack.i.h.bf16 %v931_v32  ;;  %v932_v34 = vunpack.i.l.bf16 %v931_v32 }
 0x21f   :  { %v466_v38 = vsel %vm157_vm4, 0.0, %v932_v34  ;;  %v454_v40 = vsel %vm157_vm4, %v932_v34, %v933_v33 }
 0x220   :  { %v936_v35 = vpop.permute.xlu0 %935 }
 0x221   :  { %v938_v36 = vunpack.i.h.bf16 %v936_v35  ;;  %v937_v37 = vunpack.i.l.bf16 %v936_v35 }
 0x223   :  { %v467_v39 = vsel %vm157_vm4, 0.0, %v937_v37  ;;  %v455_v41 = vsel %vm157_vm4, %v937_v37, %v938_v36 }
 0x224   :  { %v941_v42 = vpop.permute.xlu1 %940  ;;  %v802_v43 = vpack.c.bf16 %v455_v41, %v454_v40  ;;  %v805_v44 = vpack.c.bf16 %v467_v39, %v466_v38 }
 0x225   :  { %v943_v47 = vunpack.i.h.bf16 %v941_v42  ;;  %v942_v48 = vunpack.i.l.bf16 %v941_v42 }
 0x226   :  { %804 = vmatprep.subr.msk.bf16.mxu1 %vm1225_vm8, %v802_v43 }
 0x227   :  { %807 = vmatpush1.bf16.msk.msra.mxu1 %vm1237_vm10, %v805_v44  ;;  %v456_v56 = vsel %vm157_vm4, %v942_v48, %v943_v47  ;;  %v468_v57 = vsel %vm157_vm4, 0.0, %v942_v48 }
 0x228   :  { %v946_v49 = vpop.permute.xlu0 %945  ;;  %v951_v52 = vpop.permute.xlu1 %950 }
 0x229   :  { %v948_v50 = vunpack.i.h.bf16 %v946_v49  ;;  %v947_v51 = vunpack.i.l.bf16 %v946_v49  ;;  %v953_v25 = vunpack.i.h.bf16 %v951_v52  ;;  %v952_v11 = vunpack.i.l.bf16 %v951_v52 }
 0x22b   :  { %v457_v58 = vsel %vm157_vm4, %v947_v51, %v948_v50  ;;  %v469_v59 = vsel %vm157_vm4, 0.0, %v947_v51  ;;  %v507_v23 = vsel %vm206_vm11, %v953_v25, 0.0  ;;  %v506_v13 = vsel %vm206_vm11, %v952_v11, 0.0 }
 0x22c   :  { %v808_v61 = vpack.c.bf16 %v457_v58, %v456_v56  ;;  %v811_v62 = vpack.c.bf16 %v469_v59, %v468_v57  ;;  %v956_v63 = vpop.permute.xlu0 %955  ;;  %v961_v12 = vpop.permute.xlu1 %960  ;;  %v822_v17 = vpack.c.bf16 %v507_v23, %v506_v13 }
 0x22d   :  { %v958_v14 = vunpack.i.h.bf16 %v956_v63  ;;  %v957_v15 = vunpack.i.l.bf16 %v956_v63  ;;  %v963_v18 = vunpack.i.h.bf16 %v961_v12  ;;  %v962_v19 = vunpack.i.l.bf16 %v961_v12 }
 0x22e   :  { %810 = vmatprep.subr.msk.bf16.mxu1 %vm1225_vm8, %v808_v61 }
 0x22f   :  { %813 = vmatpush1.bf16.msk.msra.mxu1 %vm1237_vm10, %v811_v62  ;;  %v494_v27 = vsel %vm206_vm11, %v957_v15, %v952_v11  ;;  %v495_v46 = vsel %vm206_vm11, %v958_v14, %v953_v25  ;;  %v509_v22 = vsel %vm206_vm11, %v963_v18, 0.0  ;;  %v508_v26 = vsel %vm206_vm11, %v962_v19, 0.0 }
 0x230   :  { %815 = vmatprep.subr.bf16.mxu1 %v814_v3  ;;  %v966_v21 = vpop.permute.xlu0 %965  ;;  %v825_v45 = vpack.c.bf16 %v495_v46, %v494_v27  ;;  %v828_v53 = vpack.c.bf16 %v509_v22, %v508_v26 }
 0x231   :  { %v968_v54 = vunpack.i.h.bf16 %v966_v21  ;;  %v967_v3 = vunpack.i.l.bf16 %v966_v21 }
 0x233   :  { %817 = vmatpush1.bf16.msra.mxu1 %v816_v60  ;;  %v496_v60 = vsel %vm206_vm11, %v967_v3, %v962_v19 }
 0x234   :  { %819 = vmatprep.subr.bf16.mxu1 %v818_v24  ;;  %v497_v24 = vsel %vm206_vm11, %v968_v54, %v963_v18 }
 0x235   :  { %v831_v28 = vpack.c.bf16 %v497_v24, %v496_v60 }
 0x237   :  { %821 = vmatpush1.bf16.msra.mxu1 %v820_v20  ;;  %v520_v20 = vld [vmem:[#allocation5 + $0x10] sm:$0xff] }
 0x238   :  { %824 = vmatprep.subr.msk.bf16.mxu1 %vm1263_vm14, %v822_v17 }
 0x23b   :  { %827 = vmatpush1.bf16.msk.msra.mxu1 %vm1275_vm1, %v825_v45 }
 0x23c   :  { %830 = vmatprep.subr.msk.bf16.mxu1 %vm1263_vm14, %v828_v53 }
 0x23d   :  { %v529_v55 = vpop.permute.xlu1 %528 }
 0x23f   :  { %833 = vmatpush1.bf16.msk.msra.mxu1 %vm1275_vm1, %v831_v28 }
 0x241   :  { %v534_v35 = vpop.permute.xlu0 %533  ;;  %v539_v43 = vpop.permute.xlu1 %538 }
 0x242   :  { %742 = vmatmul.mubr.msk.f32.vlgmr.msra.gmra.mrb[0].mxu1 %vm546_vm0, %v518_v7 }
 0x243   :  { %629 = vmatprep.mubr.f32.mxu1 %v1052_v30 }
 0x245   :  { %v544_v52 = vpop.permute.xlu0 %543 }
 0x246   :  { %743 = vmatmul.mubr.msk.f32.gmra.mrb[2].mxu1 %vm546_vm0, %v519_v16 }
 0x247   :  { %635 = vmatprep.mubr.f32.mxu1 %v1052_v30 }
 0x24a   :  { %744 = vmatmul.mubr.msk.f32.gmra.mrb[4].mxu1 %vm546_vm0, %v520_v20 }
 0x24b   :  { %641 = vmatprep.mubr.f32.mxu1 %v1052_v30 }
 0x24e   :  { %745 = vmatmul.mubr.msk.f32.gmra.mrb[6].mxu1 %vm546_vm0, %v521_v29 }
 0x315   :  { %v625_v31 = vpop.f32.mrb[0].mxu1 }
 0x316   :  { %v626_v32 = vadd.f32 %v625_v31, %v529_v55  ;;  %v627_v10 = vpop.f32.mrb[1].mxu1 }
 0x317   :  { %v628_v33 = vadd.f32 %v627_v10, %v529_v55 }
 0x318   :  { %v648_v34 = vadd.f32 %v626_v32, %v1124_v2 }
 0x319   :  { %v649_v36 = vadd.f32 %v628_v33, %v1131_v4  ;;  %v631_v37 = vpop.f32.mrb[2].mxu1 }
 0x31a   :  { %v656_v38 = vmax.f32 %v648_v34, 0.0  ;;  %v632_v39 = vadd.f32 %v631_v37, %v534_v35  ;;  %v633_v40 = vpop.f32.mrb[3].mxu1 }
 0x31b   :  { %v657_v41 = vmax.f32 %v649_v36, 0.0  ;;  %v634_v42 = vadd.f32 %v633_v40, %v534_v35 }
 0x31c   :  { %664 = vst [vmem:[#allocation7] sm:$0xff] %v656_v38  ;;  %v650_v30 = vadd.f32 %v632_v39, %v1148_v8 }
 0x31d   :  { %665 = vst [vmem:[#allocation7 + $0x8] sm:$0xff] %v657_v41  ;;  %v651_v44 = vadd.f32 %v634_v42, %v1153_v9  ;;  %v637_v47 = vpop.f32.mrb[4].mxu1 }
 0x31e   :  { %v658_v48 = vmax.f32 %v650_v30, 0.0  ;;  %v638_v49 = vadd.f32 %v637_v47, %v539_v43  ;;  %v639_v2 = vpop.f32.mrb[5].mxu1 }
 0x31f   :  { %v659_v50 = vmax.f32 %v651_v44, 0.0  ;;  %v640_v51 = vadd.f32 %v639_v2, %v539_v43 }
 0x320   :  { %666 = vst [vmem:[#allocation7 + $0x10] sm:$0xff] %v658_v48  ;;  %v652_v4 = vadd.f32 %v638_v49, %v1114_v0 }
 0x321   :  { %667 = vst [vmem:[#allocation7 + $0x18] sm:$0xff] %v659_v50  ;;  %v653_v56 = vadd.f32 %v640_v51, %v1119_v1  ;;  %v643_v57 = vpop.f32.mrb[6].mxu1 }
 0x322   :  { %v660_v58 = vmax.f32 %v652_v4, 0.0  ;;  %v644_v8 = vadd.f32 %v643_v57, %v544_v52  ;;  %v645_v59 = vpop.f32.mrb[7].mxu1 }
 0x323   :  { %v661_v61 = vmax.f32 %v653_v56, 0.0  ;;  %v646_v62 = vadd.f32 %v645_v59, %v544_v52 }
 0x324   :  { %668 = vst [vmem:[#allocation7 + $0x20] sm:$0xff] %v660_v58  ;;  %v654_v9 = vadd.f32 %v644_v8, %v1136_v5 }
 0x325   :  { %669 = vst [vmem:[#allocation7 + $0x28] sm:$0xff] %v661_v61  ;;  %v655_v63 = vadd.f32 %v646_v62, %v1141_v6 }
 0x326   :  { %v662_v25 = vmax.f32 %v654_v9, 0.0 }
 0x327   :  { %v663_v0 = vmax.f32 %v655_v63, 0.0 }
 0x328   :  { %670 = vst [vmem:[#allocation7 + $0x30] sm:$0xff] %v662_v25 }
 0x329   :  { %671 = vst [vmem:[#allocation7 + $0x38] sm:$0xff] %v663_v0 }
 0x32a   :  { %1024 = shalt.err (!%p1021_p6)
}
 0x32b   :  { %s1025_s9 = scalar_lea.hbm %s1429_s5, 1024 }
 0x32c   :  { %p1026_p7 = scmp.ne.s32.totalorder %s1429_s5, %s1025_s9  ;;  %p1029_p8 = scmp.lt.u32.totalorder %s1025_s9, %s1429_s5 }
 0x32e   :  { %p1031_p9 = pnand %p1029_p8, %p1026_p7 }
 0x330   :  { %1034 = shalt.err (!%p1031_p9)
}
 0x331   :  { %683 = dma.vmem_to_hbm [thread:$0]  %s678_s30, 1024, %s1429_s5, [#allocation4], %s1042_s28, %s1042_s28, %s1043_s29  }
 0x332   :  { %1039 = dma.done.wait [#allocation4], 1024  }
 0x333   :  { %1040 = vsyncadd [#allocation4], 4294966272 }
 0x334   :  { %687 = vsyncpa [#allocation3], 1 }
 0x335   :  { %688 = vsyncpa [#allocation6], 1 }
 0x336   :  { %689 = vsyncpa [#allocation4], 1 }

</bundles_post_ra>
